<compile_context>
chip_gen: v5e
topology: v5e:2x2
jax: 0.10.0
libtpu: 0.0.40
codegen_flags: <defaults>
</compile_context>

<pallas_src>
import jax
import jax.numpy as jnp
from jax.experimental import pallas as pl
from jax.experimental.pallas import tpu as pltpu


def global_attention_kernel(x_ref, w_ref, b_ref, ctx_ref, attn_ref):
    """One batch tile of GlobalAttention.

    x_ref:    (Bt, S, H2)  VMEM  lstm_out tile
    w_ref:    (1, H2)      VMEM  nn.Linear(H2, 1).weight (lane-major, no transpose)
    b_ref:    (1, 1)       SMEM  bias scalar
    ctx_ref:  (Bt, H2)     VMEM  context vectors
    attn_ref: (Bt, S)      VMEM  softmax weights (lane-dense; wrapper adds the
                                 trailing size-1 dim to match PyTorch)
    """
    x = x_ref[...].astype(jnp.float32)                        # (Bt, S, H2)
    w = w_ref[...].astype(jnp.float32).reshape(1, 1, -1)      # (1, 1, H2)
    bias = b_ref[0, 0]                                        # scalar (SMEM)

    # scores[b, s] = <x[b, s, :], w> + bias
    # VPU broadcast-multiply + lane reduce; avoids a 1-output-column MXU matvec.
    scores = jnp.sum(x * w, axis=-1) + bias                   # (Bt, S)

    # softmax over the sequence axis (PyTorch dim=1)
    m = jnp.max(scores, axis=-1, keepdims=True)               # (Bt, 1)
    e = jnp.exp(scores - m)                                    # (Bt, S)
    denom = jnp.sum(e, axis=-1, keepdims=True)                 # (Bt, 1)
    weights = e * pl.reciprocal(denom, approx=True)            # (Bt, S)  EUP vrcp

    # context[b, :] = sum_s weights[b, s] * x[b, s, :]   (f32 accumulation)
    ctx = jnp.sum(x * weights[:, :, None], axis=1)             # (Bt, H2)

    ctx_ref[...] = ctx.astype(ctx_ref.dtype)
    attn_ref[...] = weights.astype(attn_ref.dtype)


def _physical_vmem_bytes():
    try:
        return int(pltpu.get_tpu_info().vmem_capacity_bytes)
    except Exception:
        return 64 * 1024 * 1024  # conservative floor (v7x per-TensorCore VMEM)


def _choose_batch_tile(B, S, H2, itemsize, vmem_limit_bytes):
    """Batch rows per grid step.

    Returns either B (one full block) or a multiple of 8, so the 2-D output
    blocks keep a dense, (8, 128)-friendly sublane dimension.
    """
    row_bytes = (S * H2 + H2 + S) * itemsize
    # Input + output blocks are double-buffered by the pipeline; keep ~2x headroom.
    cap = (vmem_limit_bytes // 4) // max(row_bytes, 1)
    if cap >= B:
        if B >= 16:
            # Keep >= 2 grid steps along the 'parallel' axis for v7x's 2 TCs.
            return max(8, ((B // 2) // 8) * 8)
        return B
    bt = (cap // 8) * 8
    if bt == 0:
        # A single 8-row slab barely fits (huge S*H2); best effort.
        # TODO(synk): for very large S*H2, split the sequence axis with an
        # 'arbitrary' grid dim + online-softmax accumulator instead of tiny Bt.
        return min(B, 8)
    return bt


def global_attention(lstm_out, w, b):
    """lstm_out: (B, S, H2); w: (1, H2); b: (1, 1).
    Returns (context_vector (B, H2), attention_weights (B, S, 1))."""
    B, S, H2 = lstm_out.shape
    itemsize = jnp.dtype(lstm_out.dtype).itemsize
    # Explicit scoped-VMEM limit: ~3/4 of physical, capped at 96 MiB
    # (=> 48 MiB on v7x's 64 MiB, 96 MiB on v5e/v6e's 128 MiB).
    vmem_limit = int(min(_physical_vmem_bytes() * 3 // 4, 96 * 1024 * 1024))
    Bt = _choose_batch_tile(B, S, H2, itemsize, vmem_limit)
    grid = (pl.cdiv(B, Bt),)

    ctx, attn = pl.pallas_call(
        global_attention_kernel,
        out_shape=(
            jax.ShapeDtypeStruct((B, H2), lstm_out.dtype),
            jax.ShapeDtypeStruct((B, S), lstm_out.dtype),
        ),
        grid=grid,
        in_specs=[
            pl.BlockSpec((Bt, S, H2), lambda i: (i, 0, 0)),
            pl.BlockSpec((1, H2), lambda i: (0, 0)),
            pl.BlockSpec(memory_space=pltpu.MemorySpace.SMEM),  # scalar bias
        ],
        out_specs=(
            pl.BlockSpec((Bt, H2), lambda i: (i, 0)),
            pl.BlockSpec((Bt, S), lambda i: (i, 0)),
        ),
        compiler_params=pltpu.CompilerParams(
            dimension_semantics=("parallel",),
            vmem_limit_bytes=vmem_limit,
        ),
    )(lstm_out, w, b)

    # Match the PyTorch module's attention_weights shape (B, S, 1).
    return ctx, attn.reshape(B, S, 1)


def reference_global_attention(lstm_out, w, b):
    scores = jnp.einsum("bsh,oh->bso", lstm_out, w) + b[0, 0]   # (B, S, 1)
    weights = jax.nn.softmax(scores, axis=1)
    ctx = jnp.sum(lstm_out * weights, axis=1)
    return ctx, weights


if __name__ == "__main__":
    hidden_size = 16
    H2 = hidden_size * 2          # nn.Linear(hidden_size * 2, 1)
    B, S = 2, 8

    key = jax.random.PRNGKey(0)
    k_x, k_w, k_b = jax.random.split(key, 3)

    lstm_out = jax.random.normal(k_x, (B, S, H2), dtype=jnp.float32)

    # Deterministic Linear(H2, 1) init, mimicking PyTorch U(-1/sqrt(fan_in), +1/sqrt(fan_in))
    bound = 1.0 / jnp.sqrt(jnp.float32(H2))
    w = jax.random.uniform(k_w, (1, H2), dtype=jnp.float32, minval=-bound, maxval=bound)
    b = jax.random.uniform(k_b, (1, 1), dtype=jnp.float32, minval=-bound, maxval=bound)

    ctx, attn = global_attention(lstm_out, w, b)
    ctx = jax.block_until_ready(ctx)
    attn = jax.block_until_ready(attn)

    ctx_ref, attn_ref = reference_global_attention(lstm_out, w, b)
    assert ctx.shape == (B, H2)
    assert attn.shape == (B, S, 1)
    # Tolerance accounts for the approx (EUP) reciprocal in the softmax denom.
    assert jnp.allclose(attn, attn_ref, atol=2e-3, rtol=2e-3)
    assert jnp.allclose(ctx, ctx_ref, atol=2e-3, rtol=2e-3)

    print("KERNEL_OK")
</pallas_src>

<mosaic_0001>
module attributes {stable_mosaic.version = 11 : i64} {
  func.func @global_attention_kernel(%arg0: i32, %arg1: memref<2x8x32xf32, #tpu.memory_space<vmem>>, %arg2: memref<1x32xf32, #tpu.memory_space<vmem>>, %arg3: memref<1x1xf32, #tpu.memory_space<smem>>, %arg4: memref<2x32xf32, #tpu.memory_space<vmem>>, %arg5: memref<2x8xf32, #tpu.memory_space<vmem>>) attributes {dimension_semantics = [#tpu.dimension_semantics<parallel>], iteration_bounds = array<i64: 1>, scalar_prefetch = 0 : i64, scratch_operands = 0 : i64, tpu.core_type = #tpu.core_type<tc>, window_params = [{transform_indices = @transform_0, window_bounds = array<i64: 2, 8, 32>}, {pipeline_mode = #tpu.pipeline_mode<synchronous>, transform_indices = @transform_1, window_bounds = array<i64: 1, 32>}, {transform_indices = @transform_2, window_bounds = array<i64: 1, 1>}, {transform_indices = @transform_3, window_bounds = array<i64: 2, 32>}, {transform_indices = @transform_4, window_bounds = array<i64: 2, 8>}]} {
    %c0 = arith.constant 0 : index
    %c0_0 = arith.constant 0 : index
    %c0_1 = arith.constant 0 : index
    %0 = vector.load %arg1[%c0, %c0_0, %c0_1] : memref<2x8x32xf32, #tpu.memory_space<vmem>>, vector<2x8x32xf32>
    %c0_2 = arith.constant 0 : index
    %c0_3 = arith.constant 0 : index
    %1 = vector.load %arg2[%c0_2, %c0_3] : memref<1x32xf32, #tpu.memory_space<vmem>>, vector<1x32xf32>
    %2 = vector.shape_cast %1 : vector<1x32xf32> to vector<1x1x32xf32>
    %c0_4 = arith.constant 0 : index
    %c0_5 = arith.constant 0 : index
    %3 = memref.load %arg3[%c0_4, %c0_5] : memref<1x1xf32, #tpu.memory_space<smem>>
    %4 = vector.broadcast %2 : vector<1x1x32xf32> to vector<2x8x32xf32>
    %5 = arith.mulf %0, %4 : vector<2x8x32xf32>
    %cst = arith.constant dense<0.000000e+00> : vector<2x8xf32>
    %6 = vector.multi_reduction <add>, %5, %cst [2] : vector<2x8x32xf32> to vector<2x8xf32>
    %7 = vector.broadcast %3 : f32 to vector<2x8xf32>
    %8 = arith.addf %6, %7 : vector<2x8xf32>
    %cst_6 = arith.constant dense<0xFF800000> : vector<2xf32>
    %9 = vector.multi_reduction <maximumf>, %8, %cst_6 [1] : vector<2x8xf32> to vector<2xf32>
    %10 = vector.shape_cast %9 : vector<2xf32> to vector<2x1xf32>
    %11 = vector.broadcast %10 : vector<2x1xf32> to vector<2x8xf32>
    %12 = arith.subf %8, %11 : vector<2x8xf32>
    %13 = math.exp %12 : vector<2x8xf32>
    %cst_7 = arith.constant dense<0.000000e+00> : vector<2xf32>
    %14 = vector.multi_reduction <add>, %13, %cst_7 [1] : vector<2x8xf32> to vector<2xf32>
    %15 = vector.shape_cast %14 : vector<2xf32> to vector<2x1xf32>
    %16 = tpu.reciprocal %15 {approx = true} : vector<2x1xf32> -> vector<2x1xf32>
    %17 = vector.broadcast %16 : vector<2x1xf32> to vector<2x8xf32>
    %18 = arith.mulf %13, %17 : vector<2x8xf32>
    %19 = vector.shape_cast %18 : vector<2x8xf32> to vector<2x8x1xf32>
    %20 = vector.broadcast %19 : vector<2x8x1xf32> to vector<2x8x32xf32>
    %21 = arith.mulf %0, %20 : vector<2x8x32xf32>
    %cst_8 = arith.constant dense<0.000000e+00> : vector<2x32xf32>
    %22 = vector.multi_reduction <add>, %21, %cst_8 [1] : vector<2x8x32xf32> to vector<2x32xf32>
    %c0_9 = arith.constant 0 : index
    %c0_10 = arith.constant 0 : index
    %23 = vector.load %arg4[%c0_9, %c0_10] : memref<2x32xf32, #tpu.memory_space<vmem>>, vector<2x32xf32>
    tpu.vector_store %arg4[%c0_9, %c0_10], %22 {strides = array<i32>} : memref<2x32xf32, #tpu.memory_space<vmem>>, vector<2x32xf32>,
    %c0_11 = arith.constant 0 : index
    %c0_12 = arith.constant 0 : index
    %24 = vector.load %arg5[%c0_11, %c0_12] : memref<2x8xf32, #tpu.memory_space<vmem>>, vector<2x8xf32>
    tpu.vector_store %arg5[%c0_11, %c0_12], %18 {strides = array<i32>} : memref<2x8xf32, #tpu.memory_space<vmem>>, vector<2x8xf32>,
    return
  }
  func.func @transform_0(%arg0: i32) -> (i32, i32, i32) {
    %c0_i32 = arith.constant 0 : i32
    %c0_i32_0 = arith.constant 0 : i32
    %c0_i32_1 = arith.constant 0 : i32
    return %arg0, %c0_i32, %c0_i32_0 : i32, i32, i32
  }
  func.func @transform_1(%arg0: i32) -> (i32, i32) {
    %c0_i32 = arith.constant 0 : i32
    %c0_i32_0 = arith.constant 0 : i32
    %c0_i32_1 = arith.constant 0 : i32
    return %c0_i32, %c0_i32_0 : i32, i32
  }
  func.func @transform_2(%arg0: i32) -> (i32, i32) {
    %c0_i32 = arith.constant 0 : i32
    %c0_i32_0 = arith.constant 0 : i32
    %c0_i32_1 = arith.constant 0 : i32
    return %c0_i32, %c0_i32_0 : i32, i32
  }
  func.func @transform_3(%arg0: i32) -> (i32, i32) {
    %c0_i32 = arith.constant 0 : i32
    %c0_i32_0 = arith.constant 0 : i32
    return %arg0, %c0_i32 : i32, i32
  }
  func.func @transform_4(%arg0: i32) -> (i32, i32) {
    %c0_i32 = arith.constant 0 : i32
    %c0_i32_0 = arith.constant 0 : i32
    return %arg0, %c0_i32 : i32, i32
  }
}

</mosaic_0001>

<bundles_post_ra>
// kernel: tpu_custom_call.1
= control target key start
LH: loop header
LB: loop body
LE: loop exit
PB: predicated region body
PF: predicated region fallthrough
CT: control target
= control target key end

     0   :  { %11 = vsyncpa [#allocation4], 0  ;;  %s326_s0 = inlined_call_operand.hbm [shape: f32[2,8,32], index: 0, kind: input, shape index: {}]   ;;  %s327_s1 = inlined_call_operand.vmem [shape: f32[1,32], index: 1, kind: input, shape index: {}]   ;;  %s328_s2 = inlined_call_operand.<no memory space> [shape: f32[1,1], index: 2, kind: input, shape index: {}]   ;;  %s329_s3 = inlined_call_operand.hbm [shape: f32[2,32], index: 3, kind: output, shape index: {0}]   ;;  %s330_s4 = inlined_call_operand.hbm [shape: f32[2,8], index: 4, kind: output, shape index: {1}]  }
   0x1   :  { %12 = vsyncpa [#allocation5], 0 }
   0x2   :  { %13 = vsyncpa [#allocation8], 0  ;;  %s18_s17 = sshll.u32 %s326_s0, 4  ;;  %s265_s18 = smov [#allocation3]   ;;  %s19_s17 = int_to_ptr.hbm [resolvable:$true] %s18_s17 }
   0x3   :  { %s20_s19 = sshll.u32 %s265_s18, 4  ;;  %s266_s20 = smov 128   ;;  %s21_s19 = int_to_ptr.vmem [resolvable:$true] %s20_s19 }
   0x4   :  { %s267_s21 = smov 8  }
   0x5   :  { %26 = dma.hbm_to_vmem [thread:$0]  %s19_s17, 256, %s21_s19, [#allocation4], %s266_s20, %s266_s20, %s267_s21  }
   0x6   :  { %259 = dma.done.wait [#allocation4], 256  }
   0x7   :  { %260 = vsyncadd [#allocation4], 4294967040  ;;  %v299_v0 = vld [vmem:[#allocation3] sm:$0xff]  ;;  %vm44_vm0 = vcmask 261120   ;;  %v36_v3 = vld [vmem:[#allocation3 + $0x8] sm:$0xff]  ;;  %v56_v8 = vlaneseq  ;;  %v51_v9 = vstv %s328_s2  ;;  %vm60_vm1 = vcmask 1041409  }
   0x8   :  { %v180_v1 = vld [vmem:[%s327_s1] ss:$0 sm:$0xff]  ;;  %vm63_vm2 = vcmask 58368   ;;  %v268_v18 = vmov 0   ;;  %s269_s1 = smov [#allocation7]   ;;  %s156_s27 = sshll.u32 %s330_s4, 4  ;;  %s157_s27 = int_to_ptr.hbm [resolvable:$true] %s156_s27 }
   0x9   :  { %v42_v2 = vmul.f32 %v180_v1, %v299_v0  ;;  %v43_v5 = vmul.f32 %v180_v1, %v36_v3  ;;  %v57_v10 = vand.u32 127, %v56_v8  ;;  %178 = vset.pattern.permute.xlu2 %v268_v18  ;;  %177 = vset.pattern.permute.xlu1 %v268_v18  ;;  %s154_s2 = sshll.u32 %s269_s1, 4  ;;  %s270_s4 = smov [#allocation6]   ;;  %vm131_vm3 = vcmask 254976   ;;  %s155_s2 = int_to_ptr.vmem [resolvable:$true] %s154_s2 }
   0xa   :  { %179 = vset.pattern.permute.xlu0 %v268_v18  ;;  %s143_s28 = sshll.u32 %s270_s4, 4  ;;  %s145_s5 = sshll.u32 %s329_s3, 4  ;;  %s144_s28 = int_to_ptr.vmem [resolvable:$true] %s143_s28  ;;  %s146_s5 = int_to_ptr.hbm [resolvable:$true] %s145_s5 }
   0xb   :  { %v45_v4 = vsel %vm44_vm0, %v42_v2, 0.0  ;;  %v48_v6 = vsel %vm44_vm0, %v43_v5, 0.0 }
   0xc   :  { %46 = vadd.xlane.f32.xlu0 %v45_v4 }
  0x14   :  { %49 = vadd.xlane.f32.xlu0 %v48_v6 }
  0x7f   :  { %v47_v7 = vpop.xlane.xlu0 %46 }
  0x80   :  { %v52_v11 = vadd.f32 %v51_v9, %v47_v7 }
  0x82   :  { %v58_v14 = vperm.slane %v52_v11, %v57_v10 }
  0x87   :  { %v50_v12 = vpop.xlane.xlu0 %49 }
  0x88   :  { %v53_v13 = vadd.f32 %v51_v9, %v50_v12 }
  0x8a   :  { %v59_v15 = vperm.slane %v53_v13, %v57_v10 }
  0x8c   :  { %v61_v16 = vsel %vm60_vm1, %v59_v15, %v58_v14 }
  0x8d   :  { %v64_v17 = vsel %vm63_vm2, %v61_v16, -inf }
  0x8e   :  { %65 = vmax.xlane.f32.xlu1 %v64_v17 }
 0x101   :  { %v66_v19 = vpop.xlane.xlu1 %65 }
 0x102   :  { %v68_v20 = vperm.slane %v66_v19, 0  ;;  %v69_v21 = vperm.slane %v66_v19, 1 }
 0x104   :  { %v72_v22 = vsub.f32 %v52_v11, %v68_v20  ;;  %v73_v23 = vsub.f32 %v53_v13, %v69_v21 }
 0x106   :  { %v74_v24 = vmul.f32 1.442695, %v72_v22  ;;  %v76_v25 = vmul.f32 1.442695, %v73_v23 }
 0x108   :  { %181 = vpow2.f32 %v74_v24 }
 0x109   :  { %183 = vpow2.f32 %v76_v25 }
 0x10e   :  { %v182_v26 = vpop.eup %181 }
 0x10f   :  { %v184_v27 = vpop.eup %183  ;;  %81 = vperm.xlu1 %177, %v182_v26  }
 0x110   :  { %84 = vperm.xlu2 %178, %v184_v27  }
 0x16a   :  { %v85_v28 = vpop.permute.xlu2 %84 }
 0x16b   :  { %v87_v30 = vperm.slane %v85_v28, %v57_v10 }
 0x181   :  { %v82_v29 = vpop.permute.xlu1 %81 }
 0x182   :  { %v86_v31 = vperm.slane %v82_v29, %v57_v10 }
 0x184   :  { %v88_v32 = vsel %vm60_vm1, %v87_v30, %v86_v31 }
 0x185   :  { %v90_v33 = vsel %vm63_vm2, %v88_v32, 0.0 }
 0x186   :  { %91 = vadd.xlane.f32.xlu2 %v90_v33 }
 0x1f9   :  { %v92_v34 = vpop.xlane.xlu2 %91 }
 0x1fa   :  { %185 = vrcp.f32 %v92_v34 }
 0x200   :  { %v186_v35 = vpop.eup %185 }
 0x201   :  { %v96_v36 = vperm.slane %v186_v35, 1  ;;  %v95_v37 = vperm.slane %v186_v35, 0 }
 0x203   :  { %v100_v38 = vmul.f32 %v184_v27, %v96_v36  ;;  %v99_v39 = vmul.f32 %v182_v26, %v95_v37 }
 0x205   :  { %108 = vperm.xlu1 %177, %v100_v38   ;;  %103 = vperm.xlu0 %179, %v99_v39  }
 0x277   :  { %v109_v40 = vpop.permute.xlu1 %108  ;;  %v104_v41 = vpop.permute.xlu0 %103 }
 0x278   :  { %v112_v42 = vmul.f32 %v109_v40, %v36_v3  ;;  %v134_v43 = vperm.slane %v109_v40, %v57_v10  ;;  %v111_v44 = vmul.f32 %v104_v41, %v299_v0  ;;  %v133_v45 = vperm.slane %v104_v41, %v57_v10 }
 0x27a   :  { %v120_v46 = vsel %vm44_vm0, %v112_v42, 0.0  ;;  %v113_v47 = vsel %vm44_vm0, %v111_v44, 0.0  ;;  %v135_v48 = vsel %vm60_vm1, %v134_v43, %v133_v45 }
 0x27b   :  { %v121_v49 = vrot.slane %v120_v46, 4  ;;  %v114_v50 = vrot.slane %v113_v47, 4  ;;  %137 = vst.msk [vmem:[#allocation7] sm:$0x3] %vm63_vm2, %v135_v48 }
 0x27c   :  { %159 = dma.vmem_to_hbm [thread:$0]  %s155_s2, 32, %s157_s27, [#allocation8]  }
 0x27d   :  { %v122_v51 = vadd.f32 %v121_v49, %v120_v46  ;;  %v115_v52 = vadd.f32 %v114_v50, %v113_v47 }
 0x27f   :  { %v123_v53 = vrot.slane %v122_v51, 2  ;;  %v116_v54 = vrot.slane %v115_v52, 2 }
 0x281   :  { %v124_v55 = vadd.f32 %v123_v53, %v122_v51  ;;  %v117_v56 = vadd.f32 %v116_v54, %v115_v52 }
 0x283   :  { %v125_v57 = vrot.slane %v124_v55, 1  ;;  %v118_v58 = vrot.slane %v117_v56, 1 }
 0x285   :  { %v126_v59 = vadd.f32 %v125_v57, %v124_v55  ;;  %v119_v60 = vadd.f32 %v118_v58, %v117_v56 }
 0x287   :  { %v129_v61 = vsel %vm60_vm1, %v126_v59, %v119_v60 }
 0x288   :  { %132 = vst.msk [vmem:[#allocation6] sm:$0x3] %vm131_vm3, %v129_v61 }
 0x289   :  { %148 = dma.vmem_to_hbm [thread:$0]  %s144_s28, 32, %s146_s5, [#allocation5]  }
 0x28a   :  { %261 = dma.done.wait [#allocation5], 32  }
 0x28b   :  { %262 = vsyncadd [#allocation5], 4294967264 }
 0x28c   :  { %263 = dma.done.wait [#allocation8], 32  }
 0x28d   :  { %264 = vsyncadd [#allocation8], 4294967264 }
 0x28e   :  { %168 = vsyncpa [#allocation4], 1 }
 0x28f   :  { %169 = vsyncpa [#allocation5], 1 }
 0x290   :  { %170 = vsyncpa [#allocation8], 1 }

</bundles_post_ra>
